<compile_context>
chip_gen: v7x
topology: tpu7x:2x2x1
jax: 0.10.0
libtpu: 0.0.40
codegen_flags: <defaults>
</compile_context>

<pallas_src>
import functools

import jax
import jax.numpy as jnp
from jax.experimental import pallas as pl
from jax.experimental.pallas import tpu as pltpu


def _iw_maxsquare_kernel(prob_ref, out_ref, hist_ref, sqsum_ref, *,
                         num_class, ratio, ignore_index):
    j = pl.program_id(1)
    C = num_class

    # ---- zero the per-image accumulators at the first spatial tile ---------
    @pl.when(j == 0)
    def _():
        hist_ref[...] = jnp.zeros_like(hist_ref)
        sqsum_ref[...] = jnp.zeros_like(sqsum_ref)

    # Cast in-kernel (input may be bf16; v5e has no bf16 VPU) -- the wrapper no
    # longer up-casts, so HBM traffic stays in the input's native dtype.
    p = prob_ref[0].astype(jnp.float32)                       # (C, T)

    # ---- argmax over channel (first occurrence), as torch.max(prob, 1) -----
    maxv = jnp.max(p, axis=0, keepdims=True)                  # (1, T)
    cidx = jax.lax.broadcasted_iota(jnp.int32, p.shape, 0)    # (C, T)
    argpred = jnp.min(jnp.where(p == maxv, cidx, C), axis=0, keepdims=True)
    argpred = jnp.where(maxv != jnp.float32(ignore_index),
                        argpred, jnp.int32(ignore_index))     # (1, T)

    # ---- vectorized per-class histogram + sum-of-squares accumulation ------
    # Ignored pixels have argpred == ignore_index < 0, so they hit no class;
    # this matches torch.histc(..., bins=C+1, min=-1)[1:].
    one_hot = (cidx == argpred).astype(jnp.float32)           # (C, T)
    hist_ref[...] += jnp.sum(one_hot, axis=1, keepdims=True)  # (C, 1)
    sqsum_ref[...] += jnp.sum(p * p, axis=1, keepdims=True)   # (C, 1)

    # ---- finalize this image: weights + per-image partial loss -------------
    @pl.when(j == pl.num_programs(1) - 1)
    def _():
        hist = hist_ref[...]                                  # (C, 1)
        total = jnp.sum(hist, axis=0, keepdims=True)          # (1, 1)
        total_pow = total ** (1.0 - ratio)                    # single EUP pow
        denom = jnp.maximum(hist ** ratio * total_pow,
                            jnp.float32(1.0))                 # (C, 1)
        w = pl.reciprocal(denom, approx=True)                 # (C, 1)
        if C >= 2:
            # PyTorch special case: if hist[1] == 0, weight[1] = total^-(1-ratio)
            row = jax.lax.broadcasted_iota(jnp.int32, w.shape, 0)
            w = jnp.where((row == 1) & (hist == 0.0),
                          pl.reciprocal(total_pow, approx=True), w)
        partial = jnp.sum(w * sqsum_ref[...], axis=0, keepdims=True)  # (1, 1)
        # Lane-dense, unmasked full-vreg store of the per-image partial.
        out_ref[...] = jnp.broadcast_to(partial[None], out_ref.shape)


def _pick_tile_hw(hw, c, max_tile_hw=None):
    """Largest spatial tile (lane axis) that divides H*W, is a multiple of 128,
    and keeps the (C, TILE) f32 working tile around ~4 MiB (fits v7x's smaller
    VMEM while amortizing per-step overhead on all generations)."""
    target = max(128, (4 << 20) // (c * 4))
    if max_tile_hw is not None:
        target = min(target, max_tile_hw)
    if hw <= target:
        return hw
    for t in range(target - target % 128, 0, -128):
        if hw % t == 0:
            return t
    # No 128-multiple divisor <= target: fall back to the whole row so the
    # (8, 128) BlockSpec constraint stays satisfied.
    return hw


def iw_max_square_loss(pred, prob, label=None, *, ignore_index=-1,
                       num_class=None, ratio=0.2, max_tile_hw=None):
    """JAX/Pallas equivalent of IW_MaxSquareloss.forward (label=None path)."""
    del pred  # unused in the PyTorch forward as well
    if label is not None:
        raise NotImplementedError("only the label=None path is implemented")
    N, C, H, W = prob.shape
    if num_class is None:
        num_class = C
    assert num_class == C, "broadcast in the PyTorch code requires num_class == C"

    HW = H * W
    tile_hw = _pick_tile_hw(HW, C, max_tile_hw)
    n_spatial = HW // tile_hw

    # Keep HBM traffic in the input's native dtype (e.g. bf16); cast in-kernel.
    prob_r = prob.reshape(N, C, HW)

    in_itemsize = jnp.dtype(prob_r.dtype).itemsize
    # 2x double-buffered input tile + room for in-kernel f32 temporaries
    # ((C, TILE) cast / one-hot) + fixed headroom; clamp well under v7x's 64 MiB.
    vmem_limit = 2 * C * tile_hw * in_itemsize + 8 * C * tile_hw * 4 + (4 << 20)
    vmem_limit = int(min(max(vmem_limit, 16 << 20), 48 << 20))

    kernel = functools.partial(
        _iw_maxsquare_kernel,
        num_class=C, ratio=float(ratio), ignore_index=int(ignore_index))

    # Note: C < 8 under-fills the f32 sublane axis (vregs are (8,128)); the
    # kernel is HBM-bound, so we accept the padding rather than repacking.
    partials = pl.pallas_call(
        kernel,
        out_shape=jax.ShapeDtypeStruct((N, 8, 128), jnp.float32),
        grid_spec=pltpu.PrefetchScalarGridSpec(
            num_scalar_prefetch=0,
            grid=(N, n_spatial),
            in_specs=[pl.BlockSpec((1, C, tile_hw), lambda i, j: (i, 0, j))],
            out_specs=pl.BlockSpec((1, 8, 128), lambda i, j: (i, 0, 0)),
            scratch_shapes=[pltpu.VMEM((C, 1), jnp.float32),   # histogram
                            pltpu.VMEM((C, 1), jnp.float32)],  # sum of prob^2
        ),
        compiler_params=pltpu.CompilerParams(
            dimension_semantics=("parallel", "arbitrary"),
            vmem_limit_bytes=vmem_limit),
    )(prob_r)

    # Final reduction over images and -1/(2N) scaling in plain JAX.
    return -jnp.sum(partials[:, 0, 0]) / jnp.float32(2 * N)


def _reference(prob, ignore_index=-1, ratio=0.2):
    """Pure-JAX reference mirroring the PyTorch semantics (label=None)."""
    N, C, H, W = prob.shape
    maxpred = prob.max(axis=1)
    argpred = prob.argmax(axis=1)
    argpred = jnp.where(maxpred != ignore_index, argpred, ignore_index)
    total_sum = jnp.float32(0.0)
    for i in range(N):
        lab = argpred[i]
        hist = jnp.stack([jnp.sum(lab == c).astype(jnp.float32)
                          for c in range(C)])
        tot = hist.sum()
        weight = 1.0 / jnp.maximum(hist ** ratio * tot ** (1.0 - ratio), 1.0)
        weight = weight.at[1].set(
            jnp.where(hist[1] == 0, 1.0 / tot ** (1.0 - ratio), weight[1]))
        total_sum = total_sum + jnp.sum(prob[i] ** 2 * weight[:, None, None])
    return -total_sum / (N * 2)


if __name__ == "__main__":
    key = jax.random.PRNGKey(0)
    N, C, H, W = 2, 4, 16, 16          # num_class == C == 4, ratio = 0.2
    k1, k2 = jax.random.split(key)
    logits = jax.random.normal(k1, (N, C, H, W), dtype=jnp.float32)
    prob = jax.nn.softmax(logits, axis=1)        # probabilities of `pred`
    pred = logits                                # unused by the loss

    ref = jax.block_until_ready(_reference(prob, ignore_index=-1, ratio=0.2))

    # 1) default tiling (whole 16x16 image fits one spatial tile)
    loss = iw_max_square_loss(pred, prob, ignore_index=-1, num_class=C, ratio=0.2)
    loss = jax.block_until_ready(loss)
    assert jnp.allclose(loss, ref, rtol=2e-3, atol=1e-6), (loss, ref)

    # 2) force spatial tiling (2 tiles/image) to exercise the scratch accumulators
    loss_t = iw_max_square_loss(pred, prob, ignore_index=-1, num_class=C,
                                ratio=0.2, max_tile_hw=128)
    loss_t = jax.block_until_ready(loss_t)
    assert jnp.allclose(loss_t, ref, rtol=2e-3, atol=1e-6), (loss_t, ref)

    print("KERNEL_OK")
</pallas_src>

<mosaic_0001>
module attributes {stable_mosaic.version = 11 : i64} {
  func.func @_iw_maxsquare_kernel(%arg0: i32, %arg1: i32, %arg2: memref<1x4x256xf32, #tpu.memory_space<vmem>>, %arg3: memref<1x8x128xf32, #tpu.memory_space<vmem>>, %arg4: memref<4x1xf32, #tpu.memory_space<vmem>>, %arg5: memref<4x1xf32, #tpu.memory_space<vmem>>) attributes {dimension_semantics = [#tpu.dimension_semantics<parallel>, #tpu.dimension_semantics<arbitrary>], iteration_bounds = array<i64: 2, 1>, scalar_prefetch = 0 : i64, scratch_operands = 2 : i64, tpu.core_type = #tpu.core_type<tc>, window_params = [{transform_indices = @transform_0, window_bounds = array<i64: 1, 4, 256>}, {transform_indices = @transform_1, window_bounds = array<i64: 1, 8, 128>}]} {
    %c0_i32 = arith.constant 0 : i32
    %0 = arith.cmpi eq, %arg1, %c0_i32 : i32
    %1 = arith.extui %0 : i1 to i32
    %c0_i32_0 = arith.constant 0 : i32
    %2 = arith.cmpi ne, %1, %c0_i32_0 : i32
    scf.if %2 {
      %cst_17 = arith.constant 0.000000e+00 : f32
      %36 = vector.broadcast %cst_17 : f32 to vector<4x1xf32>
      %c0_18 = arith.constant 0 : index
      %c0_19 = arith.constant 0 : index
      %37 = vector.load %arg4[%c0_18, %c0_19] : memref<4x1xf32, #tpu.memory_space<vmem>>, vector<4x1xf32>
      tpu.vector_store %arg4[%c0_18, %c0_19], %36 {strides = array<i32>} : memref<4x1xf32, #tpu.memory_space<vmem>>, vector<4x1xf32>,
      %cst_20 = arith.constant 0.000000e+00 : f32
      %38 = vector.broadcast %cst_20 : f32 to vector<4x1xf32>
      %c0_21 = arith.constant 0 : index
      %c0_22 = arith.constant 0 : index
      %39 = vector.load %arg5[%c0_21, %c0_22] : memref<4x1xf32, #tpu.memory_space<vmem>>, vector<4x1xf32>
      tpu.vector_store %arg5[%c0_21, %c0_22], %38 {strides = array<i32>} : memref<4x1xf32, #tpu.memory_space<vmem>>, vector<4x1xf32>,
    } else {
    }
    %c0 = arith.constant 0 : index
    %c0_1 = arith.constant 0 : index
    %c0_2 = arith.constant 0 : index
    %3 = vector.load %arg2[%c0, %c0_1, %c0_2] : memref<1x4x256xf32, #tpu.memory_space<vmem>>, vector<1x4x256xf32>
    %4 = vector.shape_cast %3 : vector<1x4x256xf32> to vector<4x256xf32>
    %cst = arith.constant dense<0xFF800000> : vector<256xf32>
    %5 = vector.multi_reduction <maximumf>, %4, %cst [0] : vector<4x256xf32> to vector<256xf32>
    %6 = vector.shape_cast %5 : vector<256xf32> to vector<1x256xf32>
    %7 = tpu.iota {dimensions = array<i32: 0>} : vector<4x256xi32>
    %8 = vector.broadcast %6 : vector<1x256xf32> to vector<4x256xf32>
    %9 = arith.cmpf oeq, %4, %8 : vector<4x256xf32>
    %c4_i32 = arith.constant 4 : i32
    %10 = vector.broadcast %c4_i32 : i32 to vector<4x256xi32>
    %11 = arith.select %9, %7, %10 : vector<4x256xi1>, vector<4x256xi32>
    %cst_3 = arith.constant dense<2147483647> : vector<256xi32>
    %12 = vector.multi_reduction <minsi>, %11, %cst_3 [0] : vector<4x256xi32> to vector<256xi32>
    %13 = vector.shape_cast %12 : vector<256xi32> to vector<1x256xi32>
    %cst_4 = arith.constant -1.000000e+00 : f32
    %14 = vector.broadcast %cst_4 : f32 to vector<1x256xf32>
    %15 = arith.cmpf one, %6, %14 : vector<1x256xf32>
    %c-1_i32 = arith.constant -1 : i32
    %16 = vector.broadcast %c-1_i32 : i32 to vector<1x256xi32>
    %17 = arith.select %15, %13, %16 : vector<1x256xi1>, vector<1x256xi32>
    %18 = vector.broadcast %17 : vector<1x256xi32> to vector<4x256xi32>
    %19 = arith.cmpi eq, %7, %18 : vector<4x256xi32>
    %20 = arith.extui %19 : vector<4x256xi1> to vector<4x256xi32>
    %21 = arith.sitofp %20 : vector<4x256xi32> to vector<4x256xf32>
    %c0_5 = arith.constant 0 : index
    %c0_6 = arith.constant 0 : index
    %22 = vector.load %arg4[%c0_5, %c0_6] : memref<4x1xf32, #tpu.memory_space<vmem>>, vector<4x1xf32>
    %cst_7 = arith.constant dense<0.000000e+00> : vector<4xf32>
    %23 = vector.multi_reduction <add>, %21, %cst_7 [1] : vector<4x256xf32> to vector<4xf32>
    %24 = vector.shape_cast %23 : vector<4xf32> to vector<4x1xf32>
    %25 = arith.addf %22, %24 : vector<4x1xf32>
    %c0_8 = arith.constant 0 : index
    %c0_9 = arith.constant 0 : index
    %26 = vector.load %arg4[%c0_8, %c0_9] : memref<4x1xf32, #tpu.memory_space<vmem>>, vector<4x1xf32>
    tpu.vector_store %arg4[%c0_8, %c0_9], %25 {strides = array<i32>} : memref<4x1xf32, #tpu.memory_space<vmem>>, vector<4x1xf32>,
    %c0_10 = arith.constant 0 : index
    %c0_11 = arith.constant 0 : index
    %27 = vector.load %arg5[%c0_10, %c0_11] : memref<4x1xf32, #tpu.memory_space<vmem>>, vector<4x1xf32>
    %28 = arith.mulf %4, %4 : vector<4x256xf32>
    %cst_12 = arith.constant dense<0.000000e+00> : vector<4xf32>
    %29 = vector.multi_reduction <add>, %28, %cst_12 [1] : vector<4x256xf32> to vector<4xf32>
    %30 = vector.shape_cast %29 : vector<4xf32> to vector<4x1xf32>
    %31 = arith.addf %27, %30 : vector<4x1xf32>
    %c0_13 = arith.constant 0 : index
    %c0_14 = arith.constant 0 : index
    %32 = vector.load %arg5[%c0_13, %c0_14] : memref<4x1xf32, #tpu.memory_space<vmem>>, vector<4x1xf32>
    tpu.vector_store %arg5[%c0_13, %c0_14], %31 {strides = array<i32>} : memref<4x1xf32, #tpu.memory_space<vmem>>, vector<4x1xf32>,
    %c0_i32_15 = arith.constant 0 : i32
    %33 = arith.cmpi eq, %arg1, %c0_i32_15 : i32
    %34 = arith.extui %33 : i1 to i32
    %c0_i32_16 = arith.constant 0 : i32
    %35 = arith.cmpi ne, %34, %c0_i32_16 : i32
    scf.if %35 {
      %c0_17 = arith.constant 0 : index
      %c0_18 = arith.constant 0 : index
      %36 = vector.load %arg4[%c0_17, %c0_18] : memref<4x1xf32, #tpu.memory_space<vmem>>, vector<4x1xf32>
      %cst_19 = arith.constant dense<0.000000e+00> : vector<1xf32>
      %37 = vector.multi_reduction <add>, %36, %cst_19 [0] : vector<4x1xf32> to vector<1xf32>
      %38 = vector.shape_cast %37 : vector<1xf32> to vector<1x1xf32>
      %cst_20 = arith.constant 8.000000e-01 : f32
      %39 = vector.broadcast %cst_20 : f32 to vector<1x1xf32>
      %40 = math.powf %38, %39 : vector<1x1xf32>
      %cst_21 = arith.constant 2.000000e-01 : f32
      %41 = vector.broadcast %cst_21 : f32 to vector<4x1xf32>
      %42 = math.powf %36, %41 : vector<4x1xf32>
      %43 = vector.broadcast %40 : vector<1x1xf32> to vector<4x1xf32>
      %44 = arith.mulf %42, %43 : vector<4x1xf32>
      %cst_22 = arith.constant 1.000000e+00 : f32
      %45 = vector.broadcast %cst_22 : f32 to vector<4x1xf32>
      %46 = arith.maximumf %44, %45 : vector<4x1xf32>
      %47 = tpu.reciprocal %46 {approx = true} : vector<4x1xf32> -> vector<4x1xf32>
      %48 = tpu.iota {dimensions = array<i32: 0>} : vector<4x1xi32>
      %c1_i32 = arith.constant 1 : i32
      %49 = vector.broadcast %c1_i32 : i32 to vector<4x1xi32>
      %50 = arith.cmpi eq, %48, %49 : vector<4x1xi32>
      %cst_23 = arith.constant 0.000000e+00 : f32
      %51 = vector.broadcast %cst_23 : f32 to vector<4x1xf32>
      %52 = arith.cmpf oeq, %36, %51 : vector<4x1xf32>
      %53 = arith.andi %50, %52 : vector<4x1xi1>
      %54 = tpu.reciprocal %40 {approx = true} : vector<1x1xf32> -> vector<1x1xf32>
      %55 = vector.shape_cast %54 : vector<1x1xf32> to vector<1x1xf32>
      %56 = vector.broadcast %55 : vector<1x1xf32> to vector<4x1xf32>
      %57 = arith.select %53, %56, %47 : vector<4x1xi1>, vector<4x1xf32>
      %c0_24 = arith.constant 0 : index
      %c0_25 = arith.constant 0 : index
      %58 = vector.load %arg5[%c0_24, %c0_25] : memref<4x1xf32, #tpu.memory_space<vmem>>, vector<4x1xf32>
      %59 = arith.mulf %57, %58 : vector<4x1xf32>
      %cst_26 = arith.constant dense<0.000000e+00> : vector<1xf32>
      %60 = vector.multi_reduction <add>, %59, %cst_26 [0] : vector<4x1xf32> to vector<1xf32>
      %61 = vector.shape_cast %60 : vector<1xf32> to vector<1x1xf32>
      %62 = vector.shape_cast %61 : vector<1x1xf32> to vector<1x1x1xf32>
      %63 = vector.shape_cast %62 : vector<1x1x1xf32> to vector<1x1x1xf32>
      %64 = vector.broadcast %63 : vector<1x1x1xf32> to vector<1x8x128xf32>
      %c0_27 = arith.constant 0 : index
      %c0_28 = arith.constant 0 : index
      %c0_29 = arith.constant 0 : index
      %65 = vector.load %arg3[%c0_27, %c0_28, %c0_29] : memref<1x8x128xf32, #tpu.memory_space<vmem>>, vector<1x8x128xf32>
      tpu.vector_store %arg3[%c0_27, %c0_28, %c0_29], %64 {strides = array<i32>} : memref<1x8x128xf32, #tpu.memory_space<vmem>>, vector<1x8x128xf32>,
    } else {
    }
    return
  }
  func.func @transform_0(%arg0: i32, %arg1: i32) -> (i32, i32, i32) {
    %c0_i32 = arith.constant 0 : i32
    %c0_i32_0 = arith.constant 0 : i32
    return %arg0, %c0_i32, %arg1 : i32, i32, i32
  }
  func.func @transform_1(%arg0: i32, %arg1: i32) -> (i32, i32, i32) {
    %c0_i32 = arith.constant 0 : i32
    %c0_i32_0 = arith.constant 0 : i32
    %c0_i32_1 = arith.constant 0 : i32
    return %arg0, %c0_i32, %c0_i32_0 : i32, i32, i32
  }
}

</mosaic_0001>

<bundles_post_ra>
// kernel: tpu_custom_call.1
= control target key start
LH: loop header
LB: loop body
LE: loop exit
PB: predicated region body
PF: predicated region fallthrough
CT: control target
= control target key end

     0   :  { %6 = vsyncpa [#allocation5], 0  ;;  %s849_s0 = inlined_call_operand.hbm [shape: f32[2,4,256], index: 0, kind: input, shape index: {}]   ;;  %s850_s1 = inlined_call_operand.hbm [shape: f32[2,8,128], index: 1, kind: output, shape index: {}]  }
   0x1   :  { %8 = vsyncpa [#allocation5 + $0x1], 0 }
   0x2   :  { %9 = vsyncpa [#allocation6], 0 }
   0x3   :  { %11 = vsyncpa [#allocation6 + $0x1], 0  ;;  %s652_s6 = smov 0   ;;  %s654_s7 = smov 0  }
   0x4   :  { %s656_s8 = smov 0   ;;  %s658_s9 = smov 0  }
   0x5   :  { %s660_s10 = smov 0   ;;  %s662_s11 = smov 0  }
   0x6 LB: > { %s374_s12 = sadd.s32 4294967295, %s635_s11   ;;  %s375_s13 = sadd.s32 4294967294, %s635_s11   ;;  %s635_s11 = sphi %s662_s11, %s17_s11   ;;  %s631_s10 = sphi %s660_s10, %s866_s10   ;;  %s627_s9 = sphi %s658_s9, %s865_s9   ;;  %s623_s8 = sphi %s656_s8, %s864_s8   ;;  %s619_s7 = sphi %s654_s7, %s863_s7   ;;  %s615_s6 = sphi %s652_s6, %s862_s6  }
   0x7   : > { %s29_s14 = sadd.s32 1, %s631_s10  ;;  %s38_s15 = sadd.s32 1, %s623_s8 }
   0x8   : > { %p31_p0 = scmp.ge.s32.totalorder %s29_s14, 2  ;;  %p45_p1 = scmp.ne.s32.totalorder %s623_s8, %s619_s7 }
   0x9   : > { %p46_p2 = scmp.eq.s32.totalorder %s635_s11, 0  ;;  %p51_p3 = scmp.ne.s32.totalorder %s619_s7, %s615_s6 }
   0xa   : > { %s868_s14 = smov (%p31_p0, %s29_s14), 0  ;;  %p52_p5 = scmp.eq.s32.totalorder %s374_s12, 0 }
   0xb   : > { %p693_p4 = por %p46_p2, %p45_p1  ;;  %s33_s17 = ssub.s32 %s631_s10, %s868_s14 }
   0xc   : > { %p75_p6 = scmp.eq.s32.totalorder %s374_s12, 1  ;;  %p36_p7 = scmp.eq.s32.totalorder %s33_s17, 0 }
   0xd   : > { %p699_p8 = por %p52_p5, %p51_p3  ;;  %p81_p10 = scmp.eq.s32.totalorder %s375_s13, 1 }
   0xe   : > { %p703_p9 = por %p75_p6, %p45_p1  ;;  %p455_p13 = scmp.lt.s32.totalorder %s635_s11, 2 }
   0xf   : > { %s708_s20 = scalar_select %p36_p7, %s623_s8, %s38_s15  }
  0x10   : > { %s854_s19 = scalar_select %p703_p9, 1, 0 }
  0x11   : > { %p710_p11 = por %p81_p10, %p51_p3  ;;  %s101_s22 = sand.u32 1, %s623_s8  }
  0x12   : > { %s378_s23 = sshll.u32 %s101_s22, 3  ;;  %s390_s24 = sshll.u32 %s631_s10, 7 }
  0x13   : > { %s855_s21 = scalar_select %p710_p11, 1, 0 }
  0x14   : > { %s721_s27 = scalar_lea.hbm %s849_s0, %s390_s24  ;;  %s105_s28 = scalar_lea.vmem [#allocation4], %s378_s23 }
  0x15   : > { %s115_s29 = sshll.u32 %s105_s28, 4  ;;  %p727_p0 = pnand %p455_p13, %p693_p4  ;;  %s723_s29 = int_to_ptr.vmem [resolvable:$true] %s115_s29 }
  0x16   : > { %s102_s2 = scalar_lea.sflag [#allocation5], %s101_s22  ;;  %s523_s3 = scalar_lea.hbm %s721_s27, 128 }
  0x17   : > { %p524_p3 = scmp.ne.s32.totalorder %s721_s27, %s523_s3  ;;  %p525_p5 = pneg %p727_p0 }
  0x18   : > { %s528_s12 = scalar_lea.hbm %s849_s0, 256  ;;  %p529_p4 = scmp.lt.u32.totalorder %s721_s27, %s849_s0 }
  0x19   : > { %p526_p6 = pnand %p525_p5, %p524_p3  ;;  %p530_p10 = scmp.lt.u32.totalorder %s528_s12, %s523_s3 }
  0x1a   : > { %p532_p12 = scmp.lt.u32.totalorder %s523_s3, %s721_s27 }
  0x1b   : > { %p527_p7 = pneg %p526_p6  ;;  %p531_p13 = por %p530_p10, %p529_p4 }
  0x1d   : > { %p533_p1 = por %p532_p12, %p531_p13 }
  0x1f   : > { %p534_p2 = pnand %p533_p1, %p527_p7 }
  0x21   : > { %537 = shalt.err (!%p534_p2)
}
  0x22   : > { %s538_s16 = scalar_lea.vmem %s723_s29, 128  ;;  %s637_s17 = smov [#allocation4]  }
  0x23   : > { %p539_p3 = scmp.ne.s32.totalorder %s723_s29, %s538_s16  ;;  %s543_s22 = sshll.u32 %s637_s17, 4  ;;  %s544_s22 = int_to_ptr.vmem [resolvable:$false] %s543_s22 }
  0x24   : > { %s545_s23 = scalar_lea.vmem %s544_s22, 256  ;;  %p546_p9 = scmp.lt.s32.totalorder %s723_s29, %s544_s22 }
  0x25   : > { %p541_p6 = pnand %p539_p3, %p525_p5  ;;  %p547_p4 = scmp.lt.s32.totalorder %s545_s23, %s538_s16 }
  0x27   : > { %p542_p11 = pneg %p541_p6  ;;  %p548_p10 = por %p547_p4, %p546_p9 }
  0x29   : > { %p549_p12 = pnand %p548_p10, %p542_p11 }
  0x2b   : > { %552 = shalt.err (!%p549_p12)
}
  0x2c   : > { %450 = dma.hbm_to_vmem [thread:$0]  (!%p727_p0), %s721_s27, 128, %s723_s29, %s102_s2  }
  0x2d   : > { %p857_p1 = scmp.lt.s32.totalorder %s635_s11, 3  ;;  %p858_p2 = scmp.ge.s32.totalorder %s635_s11, 1 }
  0x2f   : > { %p121_p5 = pnand %p858_p2, %p857_p1 }
  0x30   : > { %s763_s24 = sand.u32 (!%p121_p5), 1, %s619_s7  }
  0x31   : > { %124 = sbr.rel (%p121_p5) target bundleno = 467 (0x1d3), region = 24  ;;  %s382_s25 = sshll.u32 (!%p121_p5), %s763_s24, 3 }
  0x32   : > { %s127_s26 = scalar_lea.sflag (!%p121_p5), [#allocation5], %s763_s24  ;;  %s130_s28 = scalar_lea.vmem (!%p121_p5), [#allocation4], %s382_s25 }
  0x38   : > { %606 = dma.done.wait (%p699_p8), %s127_s26, 128  }
  0x39   : > { %608 = vsyncadd (%p699_p8), %s127_s26, 4294967168  ;;  %vm154_vm0 = vcmask 3072   ;;  %v638_v0 = vmov 0.0   ;;  %vm161_vm1 = vcmask 1043456   ;;  %v157_v1 = vld [vmem:[%s130_s28] sm:$0xff]  ;;  %v176_v6 = vlaneseq  ;;  %s148_s18 = scalar_lea.vmem [#allocation7], %s382_s25 }
  0x3a   : > { %155 = vst.msk [vmem:[#allocation2] sm:$0xf] %vm154_vm0, %v638_v0  ;;  %156 = vst.msk [vmem:[#allocation3] sm:$0xf] %vm154_vm0, %v638_v0  ;;  %v159_v2 = vcombine.high %v157_v1, %v157_v1  ;;  %v162_v3 = vsel %vm161_vm1, %v157_v1, -inf  ;;  %v232_v38 = vmul.f32 %v157_v1, %v157_v1  ;;  %v640_v53 = vmov 0  }
  0x3b   : > { %v163_v4 = vrot.slane %v162_v3, 4  ;;  %v639_v7 = vmov 839922192   ;;  %v777_v13 = vshrl.u32 %v176_v6, 7  ;;  %508 = vset.pattern.permute.xlu1 %v640_v53  ;;  %509 = vset.pattern.permute.xlu0 %v640_v53  ;;  %s293_s27 = sshll.u32 %s148_s18, 4  ;;  %s387_s29 = sshll.u32 %s627_s9, 7  ;;  %s797_s27 = int_to_ptr.vmem [resolvable:$true] %s293_s27 }
  0x3c   : > { %v169_v5 = vsel %vm161_vm1, %v159_v2, -inf  ;;  %v184_v8 = vunpack.c.l.s4 %v639_v7  ;;  %v234_v43 = vcombine.high %v232_v38, %v232_v38  ;;  %v236_v49 = vsel %vm161_vm1, %v232_v38, 0.0  ;;  %s802_s3 = scalar_lea.hbm %s850_s1, %s387_s29  ;;  %s280_s4 = scalar_lea.sflag [#allocation6], %s763_s24 }
  0x3d   : > { %v164_v9 = vmax.f32 %v162_v3, %v163_v4  ;;  %v170_v10 = vrot.slane %v169_v5, 4  ;;  %s553_s5 = scalar_lea.vmem %s797_s27, 128  ;;  %p859_p9 = scmp.ne.s32.totalorder %s854_s19, 0 }
  0x3e   : > { %v185_v14 = vunpack.c.0.s8 %v184_v8  ;;  %v237_v50 = vsel %vm161_vm1, %v234_v43, 0.0  ;;  %p554_p8 = scmp.ne.s32.totalorder %s797_s27, %s553_s5  ;;  %s641_s12 = smov [#allocation7]  }
  0x3f   : > { %v165_v11 = vrot.slane %v164_v9, 2  ;;  %v171_v12 = vmax.f32 %v169_v5, %v170_v10  ;;  %v238_v52 = vadd.f32 %v237_v50, %v236_v49  ;;  %s557_s9 = sshll.u32 %s641_s12, 4  ;;  %s558_s9 = int_to_ptr.vmem [resolvable:$false] %s557_s9 }
  0x40   : > { %v188_v19 = vsub.s32 %v185_v14, %v777_v13  ;;  %p555_p11 = pnand %p554_p8, %p859_p9  ;;  %s559_s13 = scalar_lea.vmem %s558_s9, 256 }
  0x41   : > { %v166_v15 = vmax.f32 %v164_v9, %v165_v11  ;;  %v172_v16 = vrot.slane %v171_v12, 2  ;;  %v222_v54 = vld [vmem:[#allocation2] sm:$0xf]  ;;  %v231_v57 = vld [vmem:[#allocation3] sm:$0xf]  ;;  %p560_p7 = scmp.lt.s32.totalorder %s797_s27, %s558_s9  ;;  %p561_p13 = scmp.lt.s32.totalorder %s559_s13, %s553_s5 }
  0x42   : > { %v189_v23 = vrot.slane %v777_v13, %v188_v19  ;;  %p556_p0 = pneg %p555_p11 }
  0x43   : > { %v167_v17 = vrot.slane %v166_v15, 1  ;;  %v173_v18 = vmax.f32 %v171_v12, %v172_v16  ;;  %p562_p3 = por %p561_p13, %p560_p7 }
  0x45   : > { %v168_v20 = vmax.f32 %v166_v15, %v167_v17  ;;  %v174_v21 = vrot.slane %v173_v18, 1  ;;  %p563_p6 = pnand %p562_p3, %p556_p0 }
  0x47   : > { %v175_v22 = vmax.f32 %v173_v18, %v174_v21  ;;  %vm212_vm7 = vcmp.ne.f32.partialorder %v168_v20, -1.0 }
  0x49   : > { %v180_v24 = vcombine.low %v168_v20, %v175_v22  ;;  %vm213_vm9 = vcmp.ne.f32.partialorder %v175_v22, -1.0 }
  0x4b   : > { %vm182_vm2 = vcmp.eq.f32.partialorder %v157_v1, %v180_v24 }
  0x4c   : > { %v190_v25 = vsel %vm182_vm2, %v189_v23, 4 }
  0x4d   : > { %v191_v26 = vcombine.high %v190_v25, %v190_v25  ;;  %v192_v27 = vsel %vm161_vm1, %v190_v25, 2147483647 }
  0x4e   : > { %v193_v28 = vrot.slane %v192_v27, 4 }
  0x4f   : > { %v202_v29 = vsel %vm161_vm1, %v191_v26, 2147483647 }
  0x50   : > { %vm194_vm3 = vcmp.lt.s32.totalorder %v192_v27, %v193_v28  ;;  %v203_v30 = vrot.slane %v202_v29, 4 }
  0x51   : > { %v195_v31 = vsel %vm194_vm3, %v192_v27, %v193_v28 }
  0x52   : > { %v196_v32 = vrot.slane %v195_v31, 2  ;;  %vm204_vm4 = vcmp.lt.s32.totalorder %v202_v29, %v203_v30 }
  0x53   : > { %v205_v33 = vsel %vm204_vm4, %v202_v29, %v203_v30 }
  0x54   : > { %vm197_vm5 = vcmp.lt.s32.totalorder %v195_v31, %v196_v32  ;;  %v206_v34 = vrot.slane %v205_v33, 2 }
  0x55   : > { %v198_v35 = vsel %vm197_vm5, %v195_v31, %v196_v32 }
  0x56   : > { %v199_v36 = vrot.slane %v198_v35, 1  ;;  %vm207_vm6 = vcmp.lt.s32.totalorder %v205_v33, %v206_v34 }
  0x57   : > { %v208_v37 = vsel %vm207_vm6, %v205_v33, %v206_v34 }
  0x58   : > { %vm200_vm8 = vcmp.lt.s32.totalorder %v198_v35, %v199_v36  ;;  %v209_v39 = vrot.slane %v208_v37, 1 }
  0x59   : > { %v201_v40 = vsel %vm200_vm8, %v198_v35, %v199_v36  ;;  %vm259_vm8 = vcmp.eq.s32.totalorder %v777_v13, 1 }
  0x5a   : > { %vm210_vm10 = vcmp.lt.s32.totalorder %v208_v37, %v209_v39  ;;  %v214_v41 = vsel %vm212_vm7, %v201_v40, 4294967295 }
  0x5b   : > { %v211_v42 = vsel %vm210_vm10, %v208_v37, %v209_v39  ;;  %vm216_vm11 = vcmp.eq.s32.totalorder %v777_v13, %v214_v41 }
  0x5c   : > { %v215_v44 = vsel %vm213_vm9, %v211_v42, 4294967295  ;;  %v384_v45 = vsel %vm216_vm11, 1.0, %v638_v0 }
  0x5d   : > { %vm217_vm12 = vcmp.eq.s32.totalorder %v777_v13, %v215_v44  ;;  %v223_v46 = vsel %vm161_vm1, %v384_v45, 0.0 }
  0x5e   : > { %v385_v47 = vsel %vm217_vm12, 1.0, %v638_v0 }
  0x5f   : > { %v224_v48 = vsel %vm161_vm1, %v385_v47, 0.0 }
  0x60   : > { %v225_v51 = vadd.f32 %v224_v48, %v223_v46 }
  0x62   : > { %226 = vadd.xlane.f32.xlu0 %v225_v51 }
  0x66   : > { %239 = vadd.xlane.f32.xlu0 %v238_v52 }
  0xef   : > { %v227_v55 = vpop.xlane.xlu0 %226 }
  0xf0   : > { %v228_v56 = vadd.f32 %v227_v55, %v222_v54 }
  0xf2   : > { %230 = vst.msk [vmem:[#allocation2] sm:$0xf] %vm154_vm0, %v228_v56 }
  0xf3   : > { %v240_v58 = vpop.xlane.xlu0 %239 }
  0xf4   : > { %v241_v59 = vadd.f32 %v240_v58, %v231_v57 }
  0xf6   : > { %242 = vst.msk [vmem:[#allocation3] sm:$0xf] %vm154_vm0, %v241_v59 }
  0xf9   : > { %v246_v60 = vld [vmem:[#allocation2] sm:$0xf] }
  0xfa   : > { %v247_v61 = vsel %vm154_vm0, %v246_v60, 0.0  ;;  %v421_v62 = vand.u32 2147483647, %v246_v60  ;;  %vm425_vm13 = vcmp.lt.f32.partialorder %v246_v60, 0  ;;  %vm426_vm14 = vcmp.eq.f32.partialorder %v246_v60, 0 }
  0xfb   : > { %v248_v63 = vrot.slane %v247_v61, 4  ;;  %vm438_vm3 = vcmp.ne.f32.partialorder %v246_v60, %v246_v60  ;;  %vm427_vm7 = vcmp.eq.f32.partialorder %v246_v60, 1065353216  ;;  %vm260_vm9 = vcmp.eq.f32.partialorder %v246_v60, 0.0 }
  0xfc   : > { %511 = vlog2.f32 %v421_v62  ;;  %vm430_vm15 = vcmp.eq.f32.partialorder %v421_v62, 2139095040  ;;  %vm261_vm10 = vmand %vm259_vm8, %vm260_vm9 }
  0xfd   : > { %v249_v0 = vadd.f32 %v248_v63, %v247_v61  ;;  %v264_v26 = vld [vmem:[#allocation3] sm:$0xf] }
  0xff   : > { %v250_v1 = vrot.slane %v249_v0, 2 }
 0x101   : > { %v251_v2 = vadd.f32 %v250_v1, %v249_v0 }
 0x103   : > { %v252_v3 = vrot.slane %v251_v2, 1 }
 0x105   : > { %v253_v4 = vadd.f32 %v252_v3, %v251_v2 }
 0x106   : > { %v512_v5 = vpop.eup %511 }
 0x107   : > { %v395_v6 = vand.u32 2147483647, %v253_v4  ;;  %v423_v7 = vmul.f32 0.2, %v512_v5  ;;  %vm399_vm1 = vcmp.lt.f32.partialorder %v253_v4, 0  ;;  %vm400_vm2 = vcmp.eq.f32.partialorder %v253_v4, 0 }
 0x108   : > { %vm412_vm5 = vcmp.ne.f32.partialorder %v253_v4, %v253_v4  ;;  %vm401_vm6 = vcmp.eq.f32.partialorder %v253_v4, 1065353216 }
 0x109   : > { %513 = vlog2.f32 %v395_v6  ;;  %vm404_vm4 = vcmp.eq.f32.partialorder %v395_v6, 2139095040 }
 0x10a   : > { %515 = vpow2.f32 %v423_v7 }
 0x113   : > { %v514_v8 = vpop.eup %513 }
 0x114   : > { %v397_v9 = vmul.f32 0.8, %v514_v8  ;;  %v516_v10 = vpop.eup %515 }
 0x115   : > { %v431_v11 = vsel %vm425_vm13, 2143289344, %v516_v10 }
 0x116   : > { %517 = vpow2.f32 %v397_v9  ;;  %v432_v12 = vsel %vm426_vm14, 0, %v431_v11 }
 0x117   : > { %v437_v14 = vsel %vm430_vm15, 2139095040, %v432_v12 }
 0x118   : > { %v441_v18 = vsel %vm438_vm3, 2143289344, %v437_v14 }
 0x119   : > { %v442_v22 = vsel %vm427_vm7, 1065353216, %v441_v18 }
 0x120   : > { %v518_v15 = vpop.eup %517 }
 0x121   : > { %v405_v16 = vsel %vm399_vm1, 2143289344, %v518_v15 }
 0x122   : > { %v406_v17 = vsel %vm400_vm2, 0, %v405_v16 }
 0x123   : > { %v411_v19 = vsel %vm404_vm4, 2139095040, %v406_v17 }
 0x124   : > { %v415_v20 = vsel %vm412_vm5, 2143289344, %v411_v19 }
 0x125   : > { %v416_v21 = vsel %vm401_vm6, 1065353216, %v415_v20 }
 0x126   : > { %v256_v23 = vmul.f32 %v442_v22, %v416_v21  ;;  %519 = vrcp.f32 %v416_v21 }
 0x128   : > { %v257_v24 = vmax.f32 %v256_v23, 1.0 }
 0x12a   : > { %521 = vrcp.f32 %v257_v24 }
 0x130   : > { %v520_v25 = vpop.eup %519 }
 0x134   : > { %v522_v27 = vpop.eup %521 }
 0x135   : > { %v263_v28 = vsel %vm261_vm10, %v520_v25, %v522_v27 }
 0x136   : > { %v265_v29 = vmul.f32 %v264_v26, %v263_v28 }
 0x138   : > { %v266_v30 = vsel %vm154_vm0, %v265_v29, 0.0 }
 0x139   : > { %v267_v31 = vrot.slane %v266_v30, 4 }
 0x13b   : > { %v268_v32 = vadd.f32 %v267_v31, %v266_v30 }
 0x13d   : > { %v269_v33 = vrot.slane %v268_v32, 2 }
 0x13f   : > { %v270_v34 = vadd.f32 %v269_v33, %v268_v32 }
 0x141   : > { %v271_v35 = vrot.slane %v270_v34, 1 }
 0x143   : > { %v272_v36 = vadd.f32 %v271_v35, %v270_v34 }
 0x145   : > { %275 = vperm.xlu1 %508, %v272_v36  }
 0x1c4   : > { %v276_v13 = vpop.permute.xlu1 %275 }
 0x1c5   : > { %278 = vst [vmem:[%s148_s18] sm:$0xff] %v276_v13 }
 0x1c6   : > { %566 = shalt.err (!%p563_p6)
}
 0x1c7   : > { %s567_s15 = scalar_lea.hbm %s802_s3, 128  ;;  %s571_s22 = scalar_lea.hbm %s850_s1, 256 }
 0x1c8   : > { %p568_p4 = scmp.ne.s32.totalorder %s802_s3, %s567_s15  ;;  %p572_p1 = scmp.lt.u32.totalorder %s802_s3, %s850_s1 }
 0x1c9   : > { %p573_p2 = scmp.lt.u32.totalorder %s571_s22, %s567_s15  ;;  %p575_p8 = scmp.lt.u32.totalorder %s567_s15, %s802_s3 }
 0x1ca   : > { %p569_p10 = pnand %p568_p4, %p859_p9 }
 0x1cb   : > { %p574_p5 = por %p573_p2, %p572_p1 }
 0x1cc   : > { %p570_p12 = pneg %p569_p10 }
 0x1cd   : > { %p576_p11 = por %p575_p8, %p574_p5 }
 0x1cf   : > { %p577_p0 = pnand %p576_p11, %p570_p12 }
 0x1d1   : > { %580 = shalt.err (!%p577_p0)
}
 0x1d2   : > { %445 = dma.vmem_to_hbm [thread:$0]  (%p859_p9), %s797_s27, 128, %s802_s3, %s280_s4  }
 0x1d3 PF: > { %s305_s25 = sand.u32 1, %s615_s6   ;;  %p860_p7 = scmp.ne.s32.totalorder %s855_s21, 0 }
 0x1d4   : > { %p861_p13 = scmp.ge.s32.totalorder %s635_s11, 2  ;;  %s306_s26 = scalar_lea.sflag [#allocation6], %s305_s25 }
 0x1d6   : > { %p452_p3 = pnand %p861_p13, %p860_p7 }
 0x1d8   : > { %610 = dma.done.wait (!%p452_p3), %s306_s26, 128  }
 0x1d9   : > { %612 = vsyncadd (!%p452_p3), %s306_s26, 4294967168  ;;  %s17_s11 = sadd.s32 1, %s635_s11   ;;  %s862_s6 = smov %s619_s7 }
 0x1da   : > { %p14_p6 = scmp.ge.s32.totalorder %s17_s11, 4   ;;  %s863_s7 = smov %s623_s8 }
 0x1db   : > { %s864_s8 = smov %s708_s20  ;;  %s865_s9 = smov %s631_s10 }
 0x1dc   : > { %s866_s10 = smov %s868_s14  ;;  %16 = sbr.rel (!%p14_p6) target bundleno = 6 (0x6), region = 77 }
 0x1e3   :  { %311 = vsyncpa [#allocation5], 1 }
 0x1e4   :  { %313 = vsyncpa [#allocation5 + $0x1], 1 }
 0x1e5   :  { %314 = vsyncpa [#allocation6], 1 }
 0x1e6   :  { %316 = vsyncpa [#allocation6 + $0x1], 1 }

</bundles_post_ra>
